<compile_context>
chip_gen: v6e
topology: v6e:2x2x1
jax: 0.10.0
libtpu: 0.0.40
codegen_flags: <defaults>
</compile_context>

<pallas_src>
import jax
import jax.numpy as jnp
from jax import lax
from jax.experimental import pallas as pl
from jax.experimental.pallas import tpu as pltpu


# ----------------------------------------------------------------------------
# Kernels
# ----------------------------------------------------------------------------
def _cross_kernel_full(raw_ref, feat_ref, w_ref, b_ref, out_ref):
    """Full-width path: W^T (K, K) fully resident in VMEM, grid over batch."""
    feat = feat_ref[...]                                       # (TB, K)
    # cross = feature @ W^T + b ; w_ref already holds W^T (in, out) so this is
    # the canonical MXU contraction - no per-step transpose of the weight.
    cross = lax.dot_general(
        feat, w_ref[...],
        dimension_numbers=(((1,), (0,)), ((), ())),
        preferred_element_type=jnp.float32)                    # (TB, K) f32
    cross = cross + b_ref[...].astype(jnp.float32)             # (1, K) broadcast
    # Fused VPU epilogue: input_raw * cross + feature
    out_ref[...] = (raw_ref[...].astype(jnp.float32) * cross
                    + feat.astype(jnp.float32)).astype(out_ref.dtype)


def _cross_kernel_ntiled(raw_ref, feat_full_ref, feat_tile_ref, w_ref, b_ref,
                         out_ref):
    """Column-tiled path (large K / small-VMEM parts): W^T block is (K, TN)."""
    cross = lax.dot_general(
        feat_full_ref[...], w_ref[...],                        # (TB,K)x(K,TN)
        dimension_numbers=(((1,), (0,)), ((), ())),
        preferred_element_type=jnp.float32)                    # (TB, TN) f32
    cross = cross + b_ref[...].astype(jnp.float32)
    out_ref[...] = (raw_ref[...].astype(jnp.float32) * cross
                    + feat_tile_ref[...].astype(jnp.float32)).astype(out_ref.dtype)


# ----------------------------------------------------------------------------
# Wrapper helpers
# ----------------------------------------------------------------------------
def _round_up(x, m):
    return ((x + m - 1) // m) * m


def _sublane(dtype):
    # Packed-sublane multiple: 8 for f32, 16 for bf16, 32 for int8/fp8.
    return max(8, 32 // jnp.dtype(dtype).itemsize)


def _vmem_capacity_bytes():
    try:
        return int(pltpu.get_tpu_info().vmem_capacity_bytes)
    except Exception:
        # Conservative fallback (v7x-sized); safe on every generation.
        return 64 << 20


def _choose_tiles(B, K, in_itemsize, out_itemsize, sub, capacity):
    """Pick (TB, TN) from the per-generation VMEM capacity."""
    budget = int(0.70 * capacity)                      # bytes for tiles/scratch
    weight_res = 2 * K * K * in_itemsize               # double-buffered resident W^T

    if weight_res <= budget // 3:
        # Weight fully resident; single batch grid axis.
        TN = K
        avail = max(budget - weight_res - 2 * K * in_itemsize, 1 << 20)
        per_row = 2 * K * (2 * in_itemsize + out_itemsize)     # raw+feat in, out
    else:
        # Guard (mainly v7x 64 MiB): column-tile the weight so it never eats
        # more than ~1/3 of the budget.
        tn_budget = max(budget // 3, 2 * K * 128 * in_itemsize)
        TN = max(128, ((tn_budget // (2 * K * in_itemsize)) // 128) * 128)
        TN = min(TN, _round_up(K, 128))
        avail = max(budget - 2 * K * TN * in_itemsize - 2 * TN * in_itemsize,
                    1 << 20)
        per_row = 2 * (K * in_itemsize + TN * (2 * in_itemsize + out_itemsize))

    TB = max(sub, (avail // per_row) // sub * sub)
    # Keep >= ~8 grid steps over the batch when B is large: hides DMA latency
    # and gives both v7x TensorCores work under "parallel" semantics.
    min_steps = 8
    if B >= min_steps * sub:
        TB = min(TB, _round_up(-(-B // min_steps), sub))
    TB = min(TB, _round_up(B, sub))
    return int(TB), int(TN)


# ----------------------------------------------------------------------------
# Public entry point
# ----------------------------------------------------------------------------
def cross_layer(input_data, weight, bias, *, compute_dtype=None):
    """input_data = (input_raw, feature), both (B, K).
    weight is (K, K) in PyTorch (out, in) layout; bias is (K,).
    Returns (input_raw, output) like the PyTorch module.
    compute_dtype=jnp.bfloat16 optionally halves HBM bytes (f32 accumulation
    is kept); default None preserves exact f32 semantics."""
    input_raw, feature = input_data
    B, K = feature.shape
    out_dtype = feature.dtype

    if compute_dtype is not None:
        raw_in = input_raw.astype(compute_dtype)
        feat_in = feature.astype(compute_dtype)
        w_in = weight.astype(compute_dtype)
    else:
        raw_in, feat_in, w_in = input_raw, feature, weight

    in_itemsize = jnp.dtype(feat_in.dtype).itemsize
    out_itemsize = jnp.dtype(out_dtype).itemsize
    sub = _sublane(feat_in.dtype)

    capacity = _vmem_capacity_bytes()
    TB, TN = _choose_tiles(B, K, in_itemsize, out_itemsize, sub, capacity)

    # One-time cheap XLA transpose of K^2 elements -> (in, out) layout so the
    # kernel's contraction is the canonical matmul (no in-kernel transpose).
    w_t = w_in.T
    b2 = bias.astype(jnp.float32).reshape(1, K)

    nb = -(-B // TB)
    nn = -(-K // TN)

    cost = pl.CostEstimate(
        flops=2 * B * K * K,
        bytes_accessed=(2 * B * K + K * K) * in_itemsize
                       + B * K * out_itemsize + K * 4,
        transcendentals=0)
    cparams = pltpu.CompilerParams(
        dimension_semantics=("parallel",) * (1 if nn == 1 else 2),
        vmem_limit_bytes=int(0.75 * capacity))

    if nn == 1:
        out = pl.pallas_call(
            _cross_kernel_full,
            out_shape=jax.ShapeDtypeStruct((B, K), out_dtype),
            grid_spec=pltpu.PrefetchScalarGridSpec(
                num_scalar_prefetch=0,
                grid=(nb,),
                in_specs=[
                    pl.BlockSpec((TB, K), lambda i: (i, 0)),   # input_raw tile
                    pl.BlockSpec((TB, K), lambda i: (i, 0)),   # feature tile
                    pl.BlockSpec((K, K), lambda i: (0, 0)),    # W^T, resident
                    pl.BlockSpec((1, K), lambda i: (0, 0)),    # bias, resident
                ],
                out_specs=pl.BlockSpec((TB, K), lambda i: (i, 0)),
            ),
            compiler_params=cparams,
            cost_estimate=cost,
        )(raw_in, feat_in, w_t, b2)
    else:
        # Large-K / small-VMEM path: second grid axis tiles the output columns.
        out = pl.pallas_call(
            _cross_kernel_ntiled,
            out_shape=jax.ShapeDtypeStruct((B, K), out_dtype),
            grid_spec=pltpu.PrefetchScalarGridSpec(
                num_scalar_prefetch=0,
                grid=(nb, nn),
                in_specs=[
                    pl.BlockSpec((TB, TN), lambda i, j: (i, j)),  # input_raw tile
                    pl.BlockSpec((TB, K), lambda i, j: (i, 0)),   # feature (matmul LHS)
                    pl.BlockSpec((TB, TN), lambda i, j: (i, j)),  # feature (epilogue)
                    pl.BlockSpec((K, TN), lambda i, j: (0, j)),   # W^T column tile
                    pl.BlockSpec((1, TN), lambda i, j: (0, j)),   # bias tile
                ],
                out_specs=pl.BlockSpec((TB, TN), lambda i, j: (i, j)),
            ),
            compiler_params=cparams,
            cost_estimate=cost,
        )(raw_in, feat_in, feat_in, w_t, b2)

    return (input_raw, out)


# ----------------------------------------------------------------------------
# Self-check
# ----------------------------------------------------------------------------
if __name__ == "__main__":
    B, K = 8, 32  # small shapes consistent with the module's forward

    key = jax.random.PRNGKey(0)
    k_raw, k_feat, k_w, k_b = jax.random.split(key, 4)

    input_raw = jax.random.normal(k_raw, (B, K), dtype=jnp.float32)
    feature = jax.random.normal(k_feat, (B, K), dtype=jnp.float32)
    # Deterministic "Linear(K, K)" parameters (PyTorch layout: weight (out, in))
    bound = 1.0 / (K ** 0.5)
    weight = jax.random.uniform(k_w, (K, K), jnp.float32, -bound, bound)
    bias = jax.random.uniform(k_b, (K,), jnp.float32, -bound, bound)

    raw_out, out = cross_layer((input_raw, feature), weight, bias)
    jax.block_until_ready(out)

    # Pure-JAX reference check
    cross_ref = feature @ weight.T + bias
    out_ref = input_raw * cross_ref + feature
    assert out.shape == (B, K)
    assert jnp.allclose(out, out_ref, atol=1e-5, rtol=1e-5)
    assert jnp.array_equal(raw_out, input_raw)

    print("KERNEL_OK")
</pallas_src>

<mosaic_0001>
module attributes {stable_mosaic.version = 11 : i64} {
  func.func @_cross_kernel_full(%arg0: i32, %arg1: memref<8x32xf32, #tpu.memory_space<vmem>>, %arg2: memref<8x32xf32, #tpu.memory_space<vmem>>, %arg3: memref<32x32xf32, #tpu.memory_space<vmem>>, %arg4: memref<1x32xf32, #tpu.memory_space<vmem>>, %arg5: memref<8x32xf32, #tpu.memory_space<vmem>>) attributes {dimension_semantics = [#tpu.dimension_semantics<parallel>], iteration_bounds = array<i64: 1>, scalar_prefetch = 0 : i64, scratch_operands = 0 : i64, tpu.core_type = #tpu.core_type<tc>, window_params = [{transform_indices = @transform_0, window_bounds = array<i64: 8, 32>}, {transform_indices = @transform_1, window_bounds = array<i64: 8, 32>}, {pipeline_mode = #tpu.pipeline_mode<synchronous>, transform_indices = @transform_2, window_bounds = array<i64: 32, 32>}, {pipeline_mode = #tpu.pipeline_mode<synchronous>, transform_indices = @transform_3, window_bounds = array<i64: 1, 32>}, {transform_indices = @transform_4, window_bounds = array<i64: 8, 32>}]} {
    %c0 = arith.constant 0 : index
    %c0_0 = arith.constant 0 : index
    %0 = vector.load %arg2[%c0, %c0_0] : memref<8x32xf32, #tpu.memory_space<vmem>>, vector<8x32xf32>
    %c0_1 = arith.constant 0 : index
    %c0_2 = arith.constant 0 : index
    %1 = vector.load %arg3[%c0_1, %c0_2] : memref<32x32xf32, #tpu.memory_space<vmem>>, vector<32x32xf32>
    %cst = arith.constant dense<0.000000e+00> : vector<8x32xf32>
    %2 = tpu.matmul %0, %1, %cst {dimension_numbers = #tpu.dot_dimension_numbers<[1], [0], [0], [1], [0, 0, 1, 1], [], []>} : vector<8x32xf32>, vector<32x32xf32>, vector<8x32xf32> -> vector<8x32xf32>
    %c0_3 = arith.constant 0 : index
    %c0_4 = arith.constant 0 : index
    %3 = vector.load %arg4[%c0_3, %c0_4] : memref<1x32xf32, #tpu.memory_space<vmem>>, vector<1x32xf32>
    %4 = vector.broadcast %3 : vector<1x32xf32> to vector<8x32xf32>
    %5 = arith.addf %2, %4 : vector<8x32xf32>
    %c0_5 = arith.constant 0 : index
    %c0_6 = arith.constant 0 : index
    %6 = vector.load %arg1[%c0_5, %c0_6] : memref<8x32xf32, #tpu.memory_space<vmem>>, vector<8x32xf32>
    %7 = arith.mulf %6, %5 : vector<8x32xf32>
    %8 = arith.addf %7, %0 : vector<8x32xf32>
    %c0_7 = arith.constant 0 : index
    %c0_8 = arith.constant 0 : index
    %9 = vector.load %arg5[%c0_7, %c0_8] : memref<8x32xf32, #tpu.memory_space<vmem>>, vector<8x32xf32>
    tpu.vector_store %arg5[%c0_7, %c0_8], %8 {strides = array<i32>} : memref<8x32xf32, #tpu.memory_space<vmem>>, vector<8x32xf32>,
    return
  }
  func.func @transform_0(%arg0: i32) -> (i32, i32) {
    %c0_i32 = arith.constant 0 : i32
    %c0_i32_0 = arith.constant 0 : i32
    return %arg0, %c0_i32 : i32, i32
  }
  func.func @transform_1(%arg0: i32) -> (i32, i32) {
    %c0_i32 = arith.constant 0 : i32
    %c0_i32_0 = arith.constant 0 : i32
    return %arg0, %c0_i32 : i32, i32
  }
  func.func @transform_2(%arg0: i32) -> (i32, i32) {
    %c0_i32 = arith.constant 0 : i32
    %c0_i32_0 = arith.constant 0 : i32
    %c0_i32_1 = arith.constant 0 : i32
    return %c0_i32, %c0_i32_0 : i32, i32
  }
  func.func @transform_3(%arg0: i32) -> (i32, i32) {
    %c0_i32 = arith.constant 0 : i32
    %c0_i32_0 = arith.constant 0 : i32
    %c0_i32_1 = arith.constant 0 : i32
    return %c0_i32, %c0_i32_0 : i32, i32
  }
  func.func @transform_4(%arg0: i32) -> (i32, i32) {
    %c0_i32 = arith.constant 0 : i32
    %c0_i32_0 = arith.constant 0 : i32
    return %arg0, %c0_i32 : i32, i32
  }
}

</mosaic_0001>

<bundles_post_ra>
// kernel: tpu_custom_call.1
= control target key start
LH: loop header
LB: loop body
LE: loop exit
PB: predicated region body
PF: predicated region fallthrough
CT: control target
= control target key end

     0   :  { %9 = vsyncpa [#allocation3], 0  ;;  %s321_s0 = inlined_call_operand.hbm [shape: f32[8,32], index: 0, kind: input, shape index: {}]   ;;  %s322_s1 = inlined_call_operand.hbm [shape: f32[8,32], index: 1, kind: input, shape index: {}]   ;;  %s323_s2 = inlined_call_operand.hbm [shape: f32[32,32], index: 2, kind: input, shape index: {}]   ;;  %s324_s3 = inlined_call_operand.vmem [shape: f32[1,32], index: 3, kind: input, shape index: {}]   ;;  %s325_s4 = inlined_call_operand.hbm [shape: f32[8,32], index: 4, kind: output, shape index: {}]  }
   0x1   :  { %10 = vsyncpa [#allocation6], 0 }
   0x2   :  { %11 = vsyncpa [#allocation4], 0  ;;  %s273_s15 = smov [#allocation5]   ;;  %s274_s17 = smov [#allocation2]  }
   0x3   :  { %s28_s16 = sshll.u32 %s273_s15, 4  ;;  %s18_s18 = sshll.u32 %s274_s17, 4  ;;  %s29_s16 = int_to_ptr.vmem [resolvable:$true] %s28_s16  ;;  %s19_s18 = int_to_ptr.vmem [resolvable:$true] %s18_s18 }
   0x4   :  { %s195_s19 = scalar_lea.vmem %s29_s16, 128  ;;  %p200_p1 = scmp.lt.s32.totalorder %s29_s16, %s29_s16 }
   0x5   :  { %p196_p0 = scmp.ne.s32.totalorder %s29_s16, %s195_s19  ;;  %p201_p2 = scmp.lt.s32.totalorder %s195_s19, %s195_s19 }
   0x7   :  { %p202_p3 = por %p201_p2, %p200_p1 }
   0x9   :  { %p203_p4 = pnand %p202_p3, %p196_p0 }
   0xb   :  { %206 = shalt.err (!%p203_p4)
}
   0xc   :  { %31 = dma.hbm_to_vmem [thread:$0]  %s322_s1, 128, %s29_s16, [#allocation6]  }
   0xd   :  { %s215_s22 = scalar_lea.vmem %s19_s18, 128  ;;  %p220_p6 = scmp.lt.s32.totalorder %s19_s18, %s19_s18 }
   0xe   :  { %p216_p5 = scmp.ne.s32.totalorder %s19_s18, %s215_s22  ;;  %p221_p7 = scmp.lt.s32.totalorder %s215_s22, %s215_s22 }
  0x10   :  { %p222_p8 = por %p221_p7, %p220_p6 }
  0x12   :  { %p223_p9 = pnand %p222_p8, %p216_p5 }
  0x14   :  { %226 = shalt.err (!%p223_p9)
}
  0x15   :  { %21 = dma.hbm_to_vmem [thread:$0]  %s321_s0, 128, %s19_s18, [#allocation3]  }
  0x16   :  { %s275_s25 = smov [#allocation7]  }
  0x17   :  { %s37_s26 = sshll.u32 %s275_s25, 4  ;;  %s38_s26 = int_to_ptr.vmem [resolvable:$true] %s37_s26 }
  0x18   :  { %s235_s27 = scalar_lea.vmem %s38_s26, 512  ;;  %p240_p11 = scmp.lt.s32.totalorder %s38_s26, %s38_s26 }
  0x19   :  { %p236_p10 = scmp.ne.s32.totalorder %s38_s26, %s235_s27  ;;  %p241_p12 = scmp.lt.s32.totalorder %s235_s27, %s235_s27 }
  0x1b   :  { %p242_p13 = por %p241_p12, %p240_p11 }
  0x1d   :  { %p243_p0 = pnand %p242_p13, %p236_p10 }
  0x1f   :  { %246 = shalt.err (!%p243_p0)
}
  0x20   :  { %s276_s1 = smov 128   ;;  %s277_s28 = smov 8  }
  0x21   :  { %43 = dma.hbm_to_vmem [thread:$0]  %s323_s2, 512, %s38_s26, [#allocation6], %s276_s1, %s276_s1, %s277_s28  }
  0x22   :  { %267 = dma.done.wait [#allocation3], 128  }
  0x23   :  { %268 = vsyncadd [#allocation3], 4294967168 }
  0x24   :  { %269 = dma.done.wait [#allocation6], 640  }
  0x25   :  { %270 = vsyncadd [#allocation6], 4294966656  ;;  %v278_v0 = vmov 0.0   ;;  %vm279_vm0 = vmmov 0   ;;  %v59_v1 = vld [vmem:[#allocation7 + $0x18] sm:$0xff]  ;;  %v58_v2 = vld [vmem:[#allocation7 + $0x10] sm:$0xff] }
  0x26   :  { %168 = vmatprep.subr.mxu0 %v278_v0  ;;  %176 = vmatprep.mubr.msk.f32.mxu0 %vm279_vm0, %v278_v0  ;;  %v57_v3 = vld [vmem:[#allocation7 + $0x8] sm:$0xff]  ;;  %v56_v4 = vld [vmem:[#allocation7] sm:$0xff]  ;;  %v55_v5 = vld [vmem:[#allocation5] sm:$0xff]  ;;  %vm67_vm1 = vcmask 261120   ;;  %s280_s5 = smov [#allocation8]  }
  0x27   :  { %169 = vmatpush3.msra.mxu0 %v59_v1  ;;  %v161_v6 = vld [vmem:[%s324_s3] ss:$0 sm:$0xff]  ;;  %s151_s6 = sshll.u32 %s280_s5, 4  ;;  %s152_s6 = int_to_ptr.vmem [resolvable:$true] %s151_s6 }
  0x28   :  { %170 = vmatprep.subr.mxu0 %v278_v0  ;;  %v141_v8 = vld [vmem:[#allocation2] sm:$0xff]  ;;  %s247_s7 = scalar_lea.vmem %s152_s6, 128  ;;  %p252_p2 = scmp.lt.s32.totalorder %s152_s6, %s152_s6 }
  0x29   :  { %171 = vmatpush3.msra.mxu0 %v58_v2  ;;  %p248_p1 = scmp.ne.s32.totalorder %s152_s6, %s247_s7  ;;  %p253_p3 = scmp.lt.s32.totalorder %s247_s7, %s247_s7 }
  0x2a   :  { %172 = vmatprep.subr.mxu0 %v278_v0 }
  0x2b   :  { %173 = vmatpush3.msra.mxu0 %v57_v3  ;;  %p254_p4 = por %p253_p3, %p252_p2 }
  0x2c   :  { %174 = vmatprep.subr.mxu0 %v278_v0 }
  0x2d   :  { %175 = vmatpush3.msra.mxu0 %v56_v4  ;;  %p255_p5 = pnand %p254_p4, %p248_p1 }
  0x2e   :  { %177 = vmatmul.mubr.msk.f32.vlgmr.msra.gmra.mxu0 %vm67_vm1, %v55_v5 }
  0xee   :  { %v137_v7 = vpop.f32.mrf.mxu0 }
  0xef   :  { %v138_v9 = vadd.f32 %v161_v6, %v137_v7 }
  0xf0   :  { %v178_v10 = vpop.f32.mrf.mxu0 }
  0xf1   :  { %v142_v11 = vmul.f32 %v141_v8, %v138_v9 }
  0xf3   :  { %v143_v12 = vadd.f32 %v142_v11, %v55_v5 }
  0xf5   :  { %144 = vst.msk [vmem:[#allocation8] sm:$0xff] %vm67_vm1, %v143_v12 }
  0xf6   :  { %258 = shalt.err (!%p255_p5)
}
  0xf7   :  { %154 = dma.vmem_to_hbm [thread:$0]  %s152_s6, 128, %s325_s4, [#allocation4]  }
  0xf8   :  { %271 = dma.done.wait [#allocation4], 128  }
  0xf9   :  { %272 = vsyncadd [#allocation4], 4294967168 }
  0xfa   :  { %158 = vsyncpa [#allocation3], 1 }
  0xfb   :  { %159 = vsyncpa [#allocation6], 1 }
  0xfc   :  { %160 = vsyncpa [#allocation4], 1 }

</bundles_post_ra>
